<compile_context>
chip_gen: v5e
topology: v5e:2x2
jax: 0.10.0
libtpu: 0.0.40
codegen_flags: <defaults>
</compile_context>

<pallas_src>
import functools

import jax
import jax.numpy as jnp
from jax.experimental import pallas as pl
from jax.experimental.pallas import tpu as pltpu

INF = 1e20


# ----------------------------------------------------------------------------
# Kernels
# ----------------------------------------------------------------------------
def _attention_dot_kernel(*refs, has_w, has_add, has_mask):
    """attn_type='simple' / 'mul'."""
    refs = list(refs)
    mem_ref = refs.pop(0)                            # (tb, tl, D)
    q_ref = refs.pop(0)                              # (tb, Dq)
    w_ref = refs.pop(0) if has_w else None           # (Dq, D)
    add_ref = refs.pop(0) if has_add else None       # (tb, tl)
    mask_ref = refs.pop(0) if has_mask else None     # (tb, tl)
    o_ref = refs.pop(0)                              # (tb, tl)

    q = q_ref[...]
    if has_w:
        # 'mul' attention: project the query on the MXU, f32 accumulation.
        q = jnp.dot(q, w_ref[...], preferred_element_type=jnp.float32)
    else:
        q = q.astype(jnp.float32)

    # scores[b, l] = sum_d mem[b, l, d] * q[b, d]   (VPU mul + cross-lane reduce)
    mem = mem_ref[...].astype(jnp.float32)
    scores = jnp.sum(mem * q[:, None, :], axis=-1)   # (tb, tl), f32

    if has_add:
        scores = scores + add_ref[...].astype(jnp.float32)
    if has_mask:
        m = mask_ref[...].astype(jnp.float32)
        scores = m * scores - (1.0 - m) * INF

    o_ref[...] = scores.astype(o_ref.dtype)


def _attention_add_kernel(*refs, has_add, has_mask):
    """attn_type='add' (tanh additive attention)."""
    refs = list(refs)
    mem_ref = refs.pop(0)                            # (tb, tl, D)
    q_ref = refs.pop(0)                              # (tb, Dq)
    w_ref = refs.pop(0)                              # (Dq, H)
    w2_ref = refs.pop(0)                             # (D, H)
    w3_ref = refs.pop(0)                             # (1, H)  (transposed W3)
    add_ref = refs.pop(0) if has_add else None       # (tb, tl, H)
    mask_ref = refs.pop(0) if has_mask else None     # (tb, tl)
    o_ref = refs.pop(0)                              # (tb, tl)

    tb, tl, D = mem_ref.shape

    # (tb*tl, D) @ (D, H) on the MXU, f32 accumulation.
    h2d = jnp.dot(mem_ref[...].reshape(tb * tl, D), w2_ref[...],
                  preferred_element_type=jnp.float32)            # (tb*tl, H)
    # Query projection (tiny) on the MXU.
    qp = jnp.dot(q_ref[...], w_ref[...],
                 preferred_element_type=jnp.float32)             # (tb, H)

    h = h2d.reshape(tb, tl, -1) + qp[:, None, :]                 # (tb, tl, H)
    if has_add:
        h = h + add_ref[...].astype(jnp.float32)
    h = jnp.tanh(h)                                              # EUP

    # Final projection with W3 as a VPU mul + lane reduce (avoids N=1 MXU).
    w3 = w3_ref[...].astype(jnp.float32)                         # (1, H)
    scores = jnp.sum(h * w3[None, :, :], axis=-1)                # (tb, tl)

    if has_mask:
        m = mask_ref[...].astype(jnp.float32)
        scores = m * scores - (1.0 - m) * INF

    o_ref[...] = scores.astype(o_ref.dtype)


# ----------------------------------------------------------------------------
# Wrapper
# ----------------------------------------------------------------------------
def attention_forward(query_embed, in_memory_embed, attn_mask=None,
                      addition_vec=None, W=None, W2=None, W3=None, *,
                      attn_type="simple", tb=None, tl=None,
                      vmem_budget_bytes=8 << 20):
    """Pallas version of Attention.forward.

    query_embed:     (B, Dq)
    in_memory_embed: (B, L, D)
    attn_mask:       (B, L) or None
    addition_vec:    (B, L) for 'simple'/'mul', (B, L, H) for 'add', or None
    W:               (Dq, H)  for attn_type in ('mul', 'add')
    W2:              (D,  H)  for attn_type='add'
    W3:              (H,  1)  for attn_type='add'
    returns          (B, L)
    """
    B, L, D = in_memory_embed.shape
    Bq, Dq = query_embed.shape
    assert Bq == B

    has_add = addition_vec is not None
    has_mask = attn_mask is not None
    out_dtype = query_embed.dtype
    itemsize = int(jnp.dtype(out_dtype).itemsize)

    if attn_type == "simple":
        assert W is None and Dq == D
        H = 0
    elif attn_type == "mul":
        assert W is not None and W.shape == (Dq, D)
        H = D
    elif attn_type == "add":
        assert W is not None and W2 is not None and W3 is not None
        H = W.shape[1]
        assert W.shape == (Dq, H) and W2.shape == (D, H) and W3.shape == (H, 1)
        if has_add:
            # TODO(synk): only an exact (B, L, H) addition_vec is supported for
            # 'add'; other PyTorch-broadcastable shapes are not kernelized.
            assert addition_vec.shape == (B, L, H)
    else:
        raise NotImplementedError(f"attn_type={attn_type!r}")

    # --- tiling: keep the output lane axis (L) dense (multiple of 128 when
    # tiled) and pick the batch tile from a VMEM budget so the BlockSpec
    # pipeline double-buffers without spilling.
    if tl is None:
        tl = L if L <= 1024 else 1024              # multiple of 128 and 8
    if tb is None:
        per_row = (tl * D + Dq + 3 * tl) * itemsize
        if attn_type == "add":
            per_row += (2 + has_add) * tl * H * itemsize
        tb = max(1, min(B, vmem_budget_bytes // max(per_row, 1)))
        if tb >= 8:
            tb = (tb // 8) * 8                     # sublane-aligned batch tile
        tb = min(tb, B)
    grid = (pl.cdiv(B, tb), pl.cdiv(L, tl))

    in_specs = [
        pl.BlockSpec((tb, tl, D), lambda i, j: (i, j, 0)),   # memory tile
        pl.BlockSpec((tb, Dq), lambda i, j: (i, 0)),         # query tile
    ]
    args = [in_memory_embed, query_embed]
    weight_bytes = 0

    if attn_type == "mul":
        in_specs.append(pl.BlockSpec((Dq, D), lambda i, j: (0, 0)))   # resident W
        args.append(W)
        weight_bytes += Dq * D * itemsize
    elif attn_type == "add":
        in_specs += [
            pl.BlockSpec((Dq, H), lambda i, j: (0, 0)),               # resident W
            pl.BlockSpec((D, H), lambda i, j: (0, 0)),                # resident W2
            pl.BlockSpec((1, H), lambda i, j: (0, 0)),                # resident W3^T
        ]
        args += [W, W2, W3.reshape(1, H)]
        weight_bytes += (Dq * H + D * H + H) * itemsize

    if has_add:
        if attn_type == "add":
            in_specs.append(pl.BlockSpec((tb, tl, H), lambda i, j: (i, j, 0)))
        else:
            in_specs.append(pl.BlockSpec((tb, tl), lambda i, j: (i, j)))
        args.append(addition_vec)
    if has_mask:
        in_specs.append(pl.BlockSpec((tb, tl), lambda i, j: (i, j)))
        args.append(attn_mask)

    # Advisory cost estimate (lets XLA overlap this small custom call).
    if attn_type == "add":
        flops = 2 * B * L * D * H + 2 * B * Dq * H + 2 * B * L * H
        transcendentals = B * L * H
    else:
        flops = 2 * B * L * D + (2 * B * Dq * D if attn_type == "mul" else 0)
        transcendentals = 0
    bytes_accessed = (B * L * D + B * Dq + B * L) * itemsize + weight_bytes
    if has_add:
        bytes_accessed += addition_vec.size * itemsize
    if has_mask:
        bytes_accessed += B * L * itemsize

    # VMEM limit: tiles (double-buffered, ~4x headroom), capped for v7x safety.
    tile_bytes = (tb * tl * D + tb * Dq + 3 * tb * tl) * itemsize + weight_bytes
    if attn_type == "add":
        tile_bytes += (2 + has_add) * tb * tl * H * itemsize
    vmem_limit = int(min(max(4 * tile_bytes, 1 << 20), 32 << 20))

    if attn_type == "add":
        kernel = functools.partial(_attention_add_kernel,
                                   has_add=has_add, has_mask=has_mask)
    else:
        kernel = functools.partial(_attention_dot_kernel,
                                   has_w=(attn_type == "mul"),
                                   has_add=has_add, has_mask=has_mask)

    return pl.pallas_call(
        kernel,
        out_shape=jax.ShapeDtypeStruct((B, L), out_dtype),
        grid_spec=pltpu.PrefetchScalarGridSpec(
            num_scalar_prefetch=0,
            grid=grid,
            in_specs=in_specs,
            out_specs=pl.BlockSpec((tb, tl), lambda i, j: (i, j)),
        ),
        compiler_params=pltpu.CompilerParams(
            dimension_semantics=("parallel", "parallel"),
            vmem_limit_bytes=vmem_limit,
        ),
        cost_estimate=pl.CostEstimate(flops=flops,
                                      transcendentals=transcendentals,
                                      bytes_accessed=bytes_accessed),
    )(*args)


# ----------------------------------------------------------------------------
# Pure-JAX reference
# ----------------------------------------------------------------------------
def attention_ref(query_embed, in_memory_embed, attn_mask=None,
                  addition_vec=None, W=None, W2=None, W3=None,
                  attn_type="simple"):
    if attn_type == "add":
        h = (jnp.einsum("bld,dh->blh", in_memory_embed, W2)
             + (query_embed @ W)[:, None, :])
        if addition_vec is not None:
            h = h + addition_vec
        h = jnp.tanh(h)
        scores = (h @ W3)[..., 0]
    else:
        q = query_embed @ W if attn_type == "mul" else query_embed
        scores = jnp.sum(
            in_memory_embed * q[:, None, :].astype(in_memory_embed.dtype),
            axis=-1)
        if addition_vec is not None:
            scores = scores + addition_vec
    if attn_mask is not None:
        scores = attn_mask * scores - (1.0 - attn_mask) * INF
    return scores


if __name__ == "__main__":
    batch, seq, hidden = 2, 8, 32
    key = jax.random.PRNGKey(0)
    kq, km, ka, kmask, kw, kw2, kw3, ka3 = jax.random.split(key, 8)

    query = jax.random.normal(kq, (batch, hidden), dtype=jnp.float32)
    memory = jax.random.normal(km, (batch, seq, hidden), dtype=jnp.float32)
    addition = jax.random.normal(ka, (batch, seq), dtype=jnp.float32)
    addition3 = jax.random.normal(ka3, (batch, seq, hidden), dtype=jnp.float32)
    mask = (jax.random.uniform(kmask, (batch, seq)) > 0.3).astype(jnp.float32)
    scale = jnp.sqrt(jnp.float32(hidden))
    W = jax.random.normal(kw, (hidden, hidden), dtype=jnp.float32) / scale
    W2 = jax.random.normal(kw2, (hidden, hidden), dtype=jnp.float32) / scale
    W3 = jax.random.normal(kw3, (hidden, 1), dtype=jnp.float32) / scale

    # 1) attn_type='simple' (module default), no extras.
    out0 = jax.block_until_ready(attention_forward(query, memory))
    ref0 = attention_ref(query, memory)
    assert out0.shape == (batch, seq)
    assert jnp.allclose(out0, ref0, atol=1e-4, rtol=1e-4), "simple mismatch"

    # 2) attn_type='simple' with addition_vec and attn_mask.
    out1 = jax.block_until_ready(
        attention_forward(query, memory, attn_mask=mask, addition_vec=addition))
    ref1 = attention_ref(query, memory, attn_mask=mask, addition_vec=addition)
    assert jnp.allclose(out1, ref1, atol=1e-4, rtol=1e-4), "masked mismatch"

    # 3) attn_type='mul' (query projected through W on the MXU).
    out2 = jax.block_until_ready(
        attention_forward(query, memory, W=W, attn_type="mul"))
    ref2 = attention_ref(query, memory, W=W, attn_type="mul")
    assert jnp.allclose(out2, ref2, atol=1e-3, rtol=1e-3), "mul mismatch"

    # 4) attn_type='add' (tanh additive attention) with addition_vec and mask.
    out3 = jax.block_until_ready(
        attention_forward(query, memory, attn_mask=mask, addition_vec=addition3,
                          W=W, W2=W2, W3=W3, attn_type="add"))
    ref3 = attention_ref(query, memory, attn_mask=mask, addition_vec=addition3,
                         W=W, W2=W2, W3=W3, attn_type="add")
    assert jnp.allclose(out3, ref3, atol=1e-3, rtol=1e-3), "add mismatch"

    print("KERNEL_OK")
</pallas_src>

<mosaic_0001>
module attributes {stable_mosaic.version = 11 : i64} {
  func.func @_attention_dot_kernel(%arg0: i32, %arg1: i32, %arg2: memref<2x8x32xf32, #tpu.memory_space<vmem>>, %arg3: memref<2x32xf32, #tpu.memory_space<vmem>>, %arg4: memref<2x8xf32, #tpu.memory_space<vmem>>) attributes {dimension_semantics = [#tpu.dimension_semantics<parallel>, #tpu.dimension_semantics<parallel>], iteration_bounds = array<i64: 1, 1>, scalar_prefetch = 0 : i64, scratch_operands = 0 : i64, tpu.core_type = #tpu.core_type<tc>, window_params = [{transform_indices = @transform_0, window_bounds = array<i64: 2, 8, 32>}, {transform_indices = @transform_1, window_bounds = array<i64: 2, 32>}, {transform_indices = @transform_2, window_bounds = array<i64: 2, 8>}]} {
    %c0 = arith.constant 0 : index
    %c0_0 = arith.constant 0 : index
    %0 = vector.load %arg3[%c0, %c0_0] : memref<2x32xf32, #tpu.memory_space<vmem>>, vector<2x32xf32>
    %c0_1 = arith.constant 0 : index
    %c0_2 = arith.constant 0 : index
    %c0_3 = arith.constant 0 : index
    %1 = vector.load %arg2[%c0_1, %c0_2, %c0_3] : memref<2x8x32xf32, #tpu.memory_space<vmem>>, vector<2x8x32xf32>
    %2 = vector.shape_cast %0 : vector<2x32xf32> to vector<2x1x32xf32>
    %3 = vector.broadcast %2 : vector<2x1x32xf32> to vector<2x8x32xf32>
    %4 = arith.mulf %1, %3 : vector<2x8x32xf32>
    %cst = arith.constant dense<0.000000e+00> : vector<2x8xf32>
    %5 = vector.multi_reduction <add>, %4, %cst [2] : vector<2x8x32xf32> to vector<2x8xf32>
    %c0_4 = arith.constant 0 : index
    %c0_5 = arith.constant 0 : index
    %6 = vector.load %arg4[%c0_4, %c0_5] : memref<2x8xf32, #tpu.memory_space<vmem>>, vector<2x8xf32>
    tpu.vector_store %arg4[%c0_4, %c0_5], %5 {strides = array<i32>} : memref<2x8xf32, #tpu.memory_space<vmem>>, vector<2x8xf32>,
    return
  }
  func.func @transform_0(%arg0: i32, %arg1: i32) -> (i32, i32, i32) {
    %c0_i32 = arith.constant 0 : i32
    %c0_i32_0 = arith.constant 0 : i32
    return %arg0, %arg1, %c0_i32 : i32, i32, i32
  }
  func.func @transform_1(%arg0: i32, %arg1: i32) -> (i32, i32) {
    %c0_i32 = arith.constant 0 : i32
    %c0_i32_0 = arith.constant 0 : i32
    return %arg0, %c0_i32 : i32, i32
  }
  func.func @transform_2(%arg0: i32, %arg1: i32) -> (i32, i32) {
    %c0_i32 = arith.constant 0 : i32
    return %arg0, %arg1 : i32, i32
  }
}

</mosaic_0001>

<bundles_post_ra>
// kernel: tpu_custom_call.1
= control target key start
LH: loop header
LB: loop body
LE: loop exit
PB: predicated region body
PF: predicated region fallthrough
CT: control target
= control target key end

     0   :  { %7 = vsyncpa [#allocation3], 0  ;;  %s201_s0 = inlined_call_operand.hbm [shape: f32[2,8,32], index: 0, kind: input, shape index: {}]   ;;  %s202_s1 = inlined_call_operand.hbm [shape: f32[2,32], index: 1, kind: input, shape index: {}]   ;;  %s203_s2 = inlined_call_operand.hbm [shape: f32[2,8], index: 2, kind: output, shape index: {}]  }
   0x1   :  { %8 = vsyncpa [#allocation6], 0 }
   0x2   :  { %9 = vsyncpa [#allocation4], 0  ;;  %s14_s11 = sshll.u32 %s201_s0, 4  ;;  %s172_s12 = smov [#allocation2]   ;;  %s15_s11 = int_to_ptr.hbm [resolvable:$true] %s14_s11 }
   0x3   :  { %s16_s13 = sshll.u32 %s172_s12, 4  ;;  %s28_s16 = sshll.u32 %s202_s1, 4  ;;  %s17_s13 = int_to_ptr.vmem [resolvable:$true] %s16_s13  ;;  %s29_s16 = int_to_ptr.hbm [resolvable:$true] %s28_s16 }
   0x4   :  { %s173_s17 = smov 128   ;;  %s174_s18 = smov 8  }
   0x5   :  { %22 = dma.hbm_to_vmem [thread:$0]  %s15_s11, 256, %s17_s13, [#allocation3], %s173_s17, %s173_s17, %s174_s18  }
   0x6   :  { %s175_s19 = smov [#allocation5]  }
   0x7   :  { %s30_s20 = sshll.u32 %s175_s19, 4  ;;  %s31_s20 = int_to_ptr.vmem [resolvable:$true] %s30_s20 }
   0x8   :  { %33 = dma.hbm_to_vmem [thread:$0]  %s29_s16, 32, %s31_s20, [#allocation6]  }
   0x9   :  { %166 = dma.done.wait [#allocation3], 256  }
   0xa   :  { %167 = vsyncadd [#allocation3], 4294967040 }
   0xb   :  { %168 = dma.done.wait [#allocation6], 32  }
   0xc   :  { %169 = vsyncadd [#allocation6], 4294967264  ;;  %v42_v0 = vld [vmem:[#allocation5] sm:$0x3]  ;;  %v43_v1 = vld [vmem:[#allocation2] sm:$0xff]  ;;  %vm53_vm0 = vcmask 261120   ;;  %v62_v11 = vlaneseq }
   0xd   :  { %v47_v2 = vperm.slane %v42_v0, 0  ;;  %v46_v3 = vrot.slane %v42_v0, 1  ;;  %v44_v6 = vld [vmem:[#allocation2 + $0x8] sm:$0xff]  ;;  %s176_s0 = smov [#allocation7]   ;;  %s78_s23 = sshll.u32 %s203_s2, 4  ;;  %vm66_vm1 = vcmask 1041409   ;;  %s79_s23 = int_to_ptr.hbm [resolvable:$true] %s78_s23 }
   0xe   :  { %v63_v12 = vand.u32 127, %v62_v11  ;;  %s76_s1 = sshll.u32 %s176_s0, 4  ;;  %vm69_vm2 = vcmask 58368   ;;  %s77_s1 = int_to_ptr.vmem [resolvable:$true] %s76_s1 }
   0xf   :  { %v51_v4 = vmul.f32 %v47_v2, %v43_v1  ;;  %v48_v5 = vperm.slane %v46_v3, 0 }
  0x11   :  { %v54_v7 = vsel %vm53_vm0, %v51_v4, 0.0  ;;  %v52_v8 = vmul.f32 %v48_v5, %v44_v6 }
  0x12   :  { %55 = vadd.xlane.f32.xlu0 %v54_v7 }
  0x13   :  { %v57_v9 = vsel %vm53_vm0, %v52_v8, 0.0 }
  0x1a   :  { %58 = vadd.xlane.f32.xlu0 %v57_v9 }
  0x85   :  { %v56_v10 = vpop.xlane.xlu0 %55 }
  0x86   :  { %v64_v14 = vperm.slane %v56_v10, %v63_v12 }
  0x8d   :  { %v59_v13 = vpop.xlane.xlu0 %58 }
  0x8e   :  { %v65_v15 = vperm.slane %v59_v13, %v63_v12 }
  0x90   :  { %v67_v16 = vsel %vm66_vm1, %v65_v15, %v64_v14 }
  0x91   :  { %70 = vst.msk [vmem:[#allocation7] sm:$0x3] %vm69_vm2, %v67_v16 }
  0x92   :  { %81 = dma.vmem_to_hbm [thread:$0]  %s77_s1, 32, %s79_s23, [#allocation4]  }
  0x93   :  { %170 = dma.done.wait [#allocation4], 32  }
  0x94   :  { %171 = vsyncadd [#allocation4], 4294967264 }
  0x95   :  { %86 = vsyncpa [#allocation3], 1 }
  0x96   :  { %87 = vsyncpa [#allocation6], 1 }
  0x97   :  { %88 = vsyncpa [#allocation4], 1 }

</bundles_post_ra>
